<compile_context>
chip_gen: v7x
topology: tpu7x:2x2x1
jax: 0.10.0
libtpu: 0.0.40
codegen_flags: <defaults>
</compile_context>

<pallas_src>
import functools

import jax
import jax.numpy as jnp
from jax.experimental import pallas as pl
from jax.experimental.pallas import tpu as pltpu

_LANE = 128
_MAX_BLOCK_ROWS = 1024  # 1024 x 128 f32 = 0.5 MiB per input block


def _weighted_sse_kernel(p_ref, t_ref, o_ref, *,
                         block_rows, shard_blocks, n_rows, ragged):
    c = pl.program_id(0)   # shard (parallel axis; maps to TensorCores on v7x)
    i = pl.program_id(1)   # row-block within the shard (reduction axis)

    @pl.when(i == 0)
    def _():
        o_ref[...] = jnp.zeros_like(o_ref)

    p = p_ref[...].astype(jnp.float32)
    t = t_ref[...].astype(jnp.float32)

    diff = p - t
    weighted = diff * diff * jnp.where(t > 0.5, jnp.float32(10.0),
                                       jnp.float32(1.0))

    if ragged:
        # Zero contributions from rows past the true extent (partial boundary
        # block and/or clamped overhang blocks of the last shard).
        blk = c * shard_blocks + i
        row = (jax.lax.broadcasted_iota(jnp.int32, weighted.shape, 0)
               + blk * block_rows)
        weighted = jnp.where(row < n_rows, weighted, jnp.float32(0.0))

    # Sublane-fold the (block_rows, 128) tile into the resident (8, 128)
    # output accumulator: pure VPU vreg adds, no per-step cross-lane reduce.
    o_ref[...] += jnp.sum(weighted.reshape(block_rows // 8, 8, _LANE), axis=0)


def custom_weighted_loss(prediction, target):
    assert prediction.shape == target.shape
    n_elems = int(prediction.size)

    p = prediction.reshape(-1)
    t = target.reshape(-1)

    n_rows = n_elems // _LANE
    tail = n_elems - n_rows * _LANE

    # Lane tail (< 128 elements) handled with plain jnp so the full tensors
    # are never padded/copied on the host.
    tail_sum = jnp.float32(0.0)
    if tail:
        pt = p[n_rows * _LANE:].astype(jnp.float32)
        tt = t[n_rows * _LANE:].astype(jnp.float32)
        d = pt - tt
        tail_sum = jnp.sum(d * d * jnp.where(tt > 0.5, 10.0, 1.0))

    if n_rows == 0:
        return tail_sum / jnp.float32(n_elems)

    if tail:
        p = p[: n_rows * _LANE]
        t = t[: n_rows * _LANE]
    p2 = p.reshape(n_rows, _LANE)
    t2 = t.reshape(n_rows, _LANE)

    # Sublane alignment depends on the narrowest input dtype
    # (f32 -> 8, bf16 -> 16, int8/fp8 -> 32); inputs stream in native dtype.
    itemsize = int(min(p2.dtype.itemsize, t2.dtype.itemsize))
    sub_align = 8 * max(1, 4 // itemsize)

    block_rows = min(_MAX_BLOCK_ROWS, pl.cdiv(n_rows, sub_align) * sub_align)
    num_blocks = pl.cdiv(n_rows, block_rows)

    # Shard row-blocks across a leading "parallel" axis so both TensorCores
    # are used on v7x; on 1-TC chips (v5e/v6e) shards run back-to-back.
    num_shards = 2 if num_blocks >= 2 else 1
    shard_blocks = pl.cdiv(num_blocks, num_shards)
    ragged = (num_shards * shard_blocks * block_rows) != n_rows
    needs_clamp = (num_shards * shard_blocks) != num_blocks

    if needs_clamp:
        def in_index_map(c, i):
            # Overhang blocks of the last shard re-read a valid block; their
            # contribution is zeroed by the in-kernel global-row mask.
            return (jnp.minimum(c * shard_blocks + i, num_blocks - 1), 0)
    else:
        def in_index_map(c, i):
            return (c * shard_blocks + i, 0)

    kernel = functools.partial(
        _weighted_sse_kernel,
        block_rows=block_rows, shard_blocks=shard_blocks,
        n_rows=n_rows, ragged=ragged)

    in_bytes = n_elems * (int(p2.dtype.itemsize) + int(t2.dtype.itemsize))
    out_bytes = num_shards * 8 * _LANE * 4

    partials = pl.pallas_call(
        kernel,
        out_shape=jax.ShapeDtypeStruct((num_shards * 8, _LANE), jnp.float32),
        grid=(num_shards, shard_blocks),
        in_specs=[
            pl.BlockSpec((block_rows, _LANE), in_index_map),
            pl.BlockSpec((block_rows, _LANE), in_index_map),
        ],
        out_specs=pl.BlockSpec((8, _LANE), lambda c, i: (c, 0)),
        compiler_params=pltpu.CompilerParams(
            dimension_semantics=("parallel", "arbitrary")),
        cost_estimate=pl.CostEstimate(
            flops=6 * n_elems, transcendentals=0,
            bytes_accessed=in_bytes + out_bytes),
    )(p2, t2)

    return (jnp.sum(partials) + tail_sum) / jnp.float32(n_elems)


def _reference(prediction, target):
    w = (target > 0.5).astype(jnp.float32)
    diff = (prediction.astype(jnp.float32) - target.astype(jnp.float32)) ** 2
    return jnp.mean(diff * (w * 9.0 + 1.0))


if __name__ == "__main__":
    key = jax.random.PRNGKey(0)
    kp, kt = jax.random.split(key)
    # small NCHW-shaped example inputs
    prediction = jax.random.normal(kp, (2, 4, 16, 16), dtype=jnp.float32)
    target = jax.random.uniform(kt, (2, 4, 16, 16), dtype=jnp.float32)

    loss = custom_weighted_loss(prediction, target)
    jax.block_until_ready(loss)

    ref = _reference(prediction, target)
    assert jnp.allclose(loss, ref, rtol=1e-5, atol=1e-6), (loss, ref)
    print("KERNEL_OK")
</pallas_src>

<mosaic_0001>
module attributes {stable_mosaic.version = 11 : i64} {
  func.func @_weighted_sse_kernel(%arg0: i32, %arg1: i32, %arg2: memref<16x128xf32, #tpu.memory_space<vmem>>, %arg3: memref<16x128xf32, #tpu.memory_space<vmem>>, %arg4: memref<8x128xf32, #tpu.memory_space<vmem>>) attributes {dimension_semantics = [#tpu.dimension_semantics<parallel>, #tpu.dimension_semantics<arbitrary>], iteration_bounds = array<i64: 1, 1>, scalar_prefetch = 0 : i64, scratch_operands = 0 : i64, tpu.core_type = #tpu.core_type<tc>, window_params = [{transform_indices = @transform_0, window_bounds = array<i64: 16, 128>}, {transform_indices = @transform_1, window_bounds = array<i64: 16, 128>}, {transform_indices = @transform_2, window_bounds = array<i64: 8, 128>}]} {
    %c0_i32 = arith.constant 0 : i32
    %0 = arith.cmpi eq, %arg1, %c0_i32 : i32
    %1 = arith.extui %0 : i1 to i32
    %c0_i32_0 = arith.constant 0 : i32
    %2 = arith.cmpi ne, %1, %c0_i32_0 : i32
    scf.if %2 {
      %cst_11 = arith.constant 0.000000e+00 : f32
      %18 = vector.broadcast %cst_11 : f32 to vector<8x128xf32>
      %c0_12 = arith.constant 0 : index
      %c0_13 = arith.constant 0 : index
      %19 = vector.load %arg4[%c0_12, %c0_13] : memref<8x128xf32, #tpu.memory_space<vmem>>, vector<8x128xf32>
      tpu.vector_store %arg4[%c0_12, %c0_13], %18 {strides = array<i32>} : memref<8x128xf32, #tpu.memory_space<vmem>>, vector<8x128xf32>,
    } else {
    }
    %c0 = arith.constant 0 : index
    %c0_1 = arith.constant 0 : index
    %3 = vector.load %arg2[%c0, %c0_1] : memref<16x128xf32, #tpu.memory_space<vmem>>, vector<16x128xf32>
    %c0_2 = arith.constant 0 : index
    %c0_3 = arith.constant 0 : index
    %4 = vector.load %arg3[%c0_2, %c0_3] : memref<16x128xf32, #tpu.memory_space<vmem>>, vector<16x128xf32>
    %5 = arith.subf %3, %4 : vector<16x128xf32>
    %6 = arith.mulf %5, %5 : vector<16x128xf32>
    %cst = arith.constant 5.000000e-01 : f32
    %7 = vector.broadcast %cst : f32 to vector<16x128xf32>
    %8 = arith.cmpf ogt, %4, %7 : vector<16x128xf32>
    %cst_4 = arith.constant 1.000000e+01 : f32
    %cst_5 = arith.constant 1.000000e+00 : f32
    %9 = vector.broadcast %cst_4 : f32 to vector<16x128xf32>
    %10 = vector.broadcast %cst_5 : f32 to vector<16x128xf32>
    %11 = arith.select %8, %9, %10 : vector<16x128xi1>, vector<16x128xf32>
    %12 = arith.mulf %6, %11 : vector<16x128xf32>
    %c0_6 = arith.constant 0 : index
    %c0_7 = arith.constant 0 : index
    %13 = vector.load %arg4[%c0_6, %c0_7] : memref<8x128xf32, #tpu.memory_space<vmem>>, vector<8x128xf32>
    %14 = vector.shape_cast %12 : vector<16x128xf32> to vector<2x8x128xf32>
    %cst_8 = arith.constant dense<0.000000e+00> : vector<8x128xf32>
    %15 = vector.multi_reduction <add>, %14, %cst_8 [0] : vector<2x8x128xf32> to vector<8x128xf32>
    %16 = arith.addf %13, %15 : vector<8x128xf32>
    %c0_9 = arith.constant 0 : index
    %c0_10 = arith.constant 0 : index
    %17 = vector.load %arg4[%c0_9, %c0_10] : memref<8x128xf32, #tpu.memory_space<vmem>>, vector<8x128xf32>
    tpu.vector_store %arg4[%c0_9, %c0_10], %16 {strides = array<i32>} : memref<8x128xf32, #tpu.memory_space<vmem>>, vector<8x128xf32>,
    return
  }
  func.func @transform_0(%arg0: i32, %arg1: i32) -> (i32, i32) {
    %c1_i32 = arith.constant 1 : i32
    %0 = arith.muli %arg0, %c1_i32 : i32
    %1 = arith.addi %0, %arg1 : i32
    %c0_i32 = arith.constant 0 : i32
    %c0_i32_0 = arith.constant 0 : i32
    return %1, %c0_i32 : i32, i32
  }
  func.func @transform_1(%arg0: i32, %arg1: i32) -> (i32, i32) {
    %c1_i32 = arith.constant 1 : i32
    %0 = arith.muli %arg0, %c1_i32 : i32
    %1 = arith.addi %0, %arg1 : i32
    %c0_i32 = arith.constant 0 : i32
    %c0_i32_0 = arith.constant 0 : i32
    return %1, %c0_i32 : i32, i32
  }
  func.func @transform_2(%arg0: i32, %arg1: i32) -> (i32, i32) {
    %c0_i32 = arith.constant 0 : i32
    %c0_i32_0 = arith.constant 0 : i32
    return %arg0, %c0_i32 : i32, i32
  }
}

</mosaic_0001>

<bundles_post_ra>
// kernel: tpu_custom_call.1
= control target key start
LH: loop header
LB: loop body
LE: loop exit
PB: predicated region body
PF: predicated region fallthrough
CT: control target
= control target key end

     0   :  { %7 = vsyncpa [#allocation3], 0  ;;  %s227_s0 = inlined_call_operand.hbm [shape: f32[16,128], index: 0, kind: input, shape index: {}]   ;;  %s228_s1 = inlined_call_operand.hbm [shape: f32[16,128], index: 1, kind: input, shape index: {}]   ;;  %s229_s2 = inlined_call_operand.hbm [shape: f32[8,128], index: 2, kind: output, shape index: {}]  }
   0x1   :  { %8 = vsyncpa [#allocation6], 0 }
   0x2   :  { %9 = vsyncpa [#allocation4], 0  ;;  %s170_s9 = smov [#allocation2]   ;;  %s98_s13 = scalar_lea.hbm %s227_s0, 256 }
   0x3   :  { %s19_s10 = sshll.u32 %s170_s9, 4  ;;  %p99_p0 = scmp.ne.s32.totalorder %s227_s0, %s98_s13  ;;  %s20_s10 = int_to_ptr.vmem [resolvable:$true] %s19_s10 }
   0x4   :  { %p102_p1 = scmp.lt.u32.totalorder %s98_s13, %s227_s0 }
   0x6   :  { %p104_p2 = pnand %p102_p1, %p99_p0 }
   0x8   :  { %107 = shalt.err (!%p104_p2)
}
   0x9   :  { %s108_s18 = scalar_lea.vmem %s20_s10, 256  ;;  %p113_p4 = scmp.lt.s32.totalorder %s20_s10, %s20_s10 }
   0xa   :  { %p109_p3 = scmp.ne.s32.totalorder %s20_s10, %s108_s18  ;;  %p114_p5 = scmp.lt.s32.totalorder %s108_s18, %s108_s18 }
   0xc   :  { %p115_p6 = por %p114_p5, %p113_p4 }
   0xe   :  { %p116_p7 = pnand %p115_p6, %p109_p3 }
  0x10   :  { %119 = shalt.err (!%p116_p7)
}
  0x11   :  { %s171_s19 = smov 128   ;;  %s172_s20 = smov 8  }
  0x12   :  { %25 = dma.hbm_to_vmem [thread:$0]  %s227_s0, 256, %s20_s10, [#allocation3], %s171_s19, %s171_s19, %s172_s20  }
  0x13   :  { %s173_s23 = smov [#allocation5]   ;;  %s120_s27 = scalar_lea.hbm %s228_s1, 256 }
  0x14   :  { %s35_s24 = sshll.u32 %s173_s23, 4  ;;  %p121_p8 = scmp.ne.s32.totalorder %s228_s1, %s120_s27  ;;  %s36_s24 = int_to_ptr.vmem [resolvable:$true] %s35_s24 }
  0x15   :  { %p124_p9 = scmp.lt.u32.totalorder %s120_s27, %s228_s1 }
  0x17   :  { %p126_p10 = pnand %p124_p9, %p121_p8 }
  0x19   :  { %129 = shalt.err (!%p126_p10)
}
  0x1a   :  { %s130_s4 = scalar_lea.vmem %s36_s24, 256  ;;  %p135_p12 = scmp.lt.s32.totalorder %s36_s24, %s36_s24 }
  0x1b   :  { %p131_p11 = scmp.ne.s32.totalorder %s36_s24, %s130_s4  ;;  %p136_p13 = scmp.lt.s32.totalorder %s130_s4, %s130_s4 }
  0x1d   :  { %p137_p0 = por %p136_p13, %p135_p12 }
  0x1f   :  { %p138_p1 = pnand %p137_p0, %p131_p11 }
  0x21   :  { %141 = shalt.err (!%p138_p1)
}
  0x22   :  { %41 = dma.hbm_to_vmem [thread:$0]  %s228_s1, 256, %s36_s24, [#allocation6], %s171_s19, %s171_s19, %s172_s20  }
  0x23   :  { %164 = dma.done.wait [#allocation3], 256  }
  0x24   :  { %165 = vsyncadd [#allocation3], 4294967040 }
  0x25   :  { %166 = dma.done.wait [#allocation6], 256  }
  0x26   :  { %167 = vsyncadd [#allocation6], 4294967040  ;;  %v57_v0 = vld [vmem:[#allocation2] sm:$0xff]  ;;  %v58_v1 = vld [vmem:[#allocation2 + $0x8] sm:$0xff]  ;;  %v174_v6 = vmov 1.0   ;;  %s175_s1 = smov [#allocation7]  }
  0x27   :  { %v59_v2 = vld [vmem:[#allocation5] sm:$0xff]  ;;  %v60_v3 = vld [vmem:[#allocation5 + $0x8] sm:$0xff]  ;;  %s81_s6 = sshll.u32 %s175_s1, 4  ;;  %s82_s6 = int_to_ptr.vmem [resolvable:$true] %s81_s6 }
  0x28   :  { %v61_v4 = vsub.f32 %v57_v0, %v59_v2  ;;  %vm65_vm0 = vcmp.gt.f32.partialorder %v59_v2, 0.5  ;;  %v62_v5 = vsub.f32 %v58_v1, %v60_v3  ;;  %vm66_vm1 = vcmp.gt.f32.partialorder %v60_v3, 0.5  ;;  %s142_s7 = scalar_lea.vmem %s82_s6, 128  ;;  %p147_p3 = scmp.lt.s32.totalorder %s82_s6, %s82_s6 }
  0x29   :  { %v67_v7 = vsel %vm65_vm0, 10.0, %v174_v6  ;;  %v68_v9 = vsel %vm66_vm1, 10.0, %v174_v6  ;;  %p143_p2 = scmp.ne.s32.totalorder %s82_s6, %s142_s7  ;;  %p148_p4 = scmp.lt.s32.totalorder %s142_s7, %s142_s7 }
  0x2a   :  { %v63_v8 = vmul.f32 %v61_v4, %v61_v4  ;;  %v64_v10 = vmul.f32 %v62_v5, %v62_v5 }
  0x2b   :  { %p149_p5 = por %p148_p4, %p147_p3 }
  0x2c   :  { %v69_v11 = vmul.f32 %v67_v7, %v63_v8  ;;  %v70_v12 = vmul.f32 %v68_v9, %v64_v10 }
  0x2d   :  { %p150_p6 = pnand %p149_p5, %p143_p2 }
  0x2e   :  { %v72_v13 = vadd.f32 %v70_v12, %v69_v11 }
  0x30   :  { %74 = vst [vmem:[#allocation7] sm:$0xff] %v72_v13 }
  0x31   :  { %153 = shalt.err (!%p150_p6)
}
  0x32   :  { %s154_s10 = scalar_lea.hbm %s229_s2, 128 }
  0x33   :  { %p155_p7 = scmp.ne.s32.totalorder %s229_s2, %s154_s10  ;;  %p158_p8 = scmp.lt.u32.totalorder %s154_s10, %s229_s2 }
  0x35   :  { %p160_p9 = pnand %p158_p8, %p155_p7 }
  0x37   :  { %163 = shalt.err (!%p160_p9)
}
  0x38   :  { %84 = dma.vmem_to_hbm [thread:$0]  %s82_s6, 128, %s229_s2, [#allocation4]  }
  0x39   :  { %168 = dma.done.wait [#allocation4], 128  }
  0x3a   :  { %169 = vsyncadd [#allocation4], 4294967168 }
  0x3b   :  { %88 = vsyncpa [#allocation3], 1 }
  0x3c   :  { %89 = vsyncpa [#allocation6], 1 }
  0x3d   :  { %90 = vsyncpa [#allocation4], 1 }

</bundles_post_ra>
